<compile_context>
chip_gen: v7x
topology: tpu7x:2x2x1
jax: 0.10.0
libtpu: 0.0.40
codegen_flags: <defaults>
</compile_context>

<pallas_src>
import functools

import jax
import jax.numpy as jnp
from jax.experimental import pallas as pl
from jax.experimental.pallas import tpu as pltpu

_LANE = 128      # vreg lane width      (last-dim tiling quantum)
_SUBLANE = 8     # vreg sublane width   (second-last-dim tiling quantum)


def _round_up(x, m):
    return (x + m - 1) // m * m


def _pad2d(a, rows, cols):
    return jnp.pad(a, ((0, rows - a.shape[0]), (0, cols - a.shape[1])))


def _detr_head_kernel(x_ref,
                      wcat_ref, bcat_ref,
                      w2_ref, b2_ref,
                      w3_ref, b3_ref,
                      scale_ref,
                      out_ref,
                      *, split):
    """Fused DETR head on one (TILE_M, D_pad) row tile.

    t   = x @ [Wc_slab | W1] + [bc_slab | b1]          (one wide MXU pass)
    cls = t[:, :split]                                  (class logits slab)
    h   = relu(t[:, split:])                            (bbox hidden 1)
    box = tanh(relu(h @ W2 + b2) @ W3_slab + b3_slab) * scale_slab
    out = cls + box      (disjoint column ranges -> pure elementwise add)

    All intermediates stay in VMEM / vregs; x is read from HBM once and a
    single lane-dense output slab is written.
    """
    mm_dtype = wcat_ref.dtype                       # f32 or bf16 matmul operands
    x = x_ref[...].astype(mm_dtype)

    t = jnp.dot(x, wcat_ref[...], preferred_element_type=jnp.float32) + bcat_ref[...]

    cls = t[:, :split]                              # zeros outside [0, n_cls)
    h = jnp.maximum(t[:, split:], 0.0)

    h = jnp.dot(h.astype(mm_dtype), w2_ref[...],
                preferred_element_type=jnp.float32) + b2_ref[...]
    h = jnp.maximum(h, 0.0)

    box = jnp.dot(h.astype(mm_dtype), w3_ref[...],
                  preferred_element_type=jnp.float32) + b3_ref[...]
    box = jnp.tanh(box) * scale_ref[...]            # zeros outside [n_cls, n_cls+n_box)

    out_ref[...] = (cls + box).astype(out_ref.dtype)


def init_detr_head_params(key, hidden_dim, num_class, box_dim=7,
                          dtype=jnp.float32):
    """Deterministic params matching the PyTorch module's layer shapes.
    Weights stored transposed (in_dim, out_dim); biases stored as (1, out_dim)."""
    def linear(k, n_in, n_out):
        wk, bk = jax.random.split(k)
        bound = 1.0 / float(n_in) ** 0.5
        w = jax.random.uniform(wk, (n_in, n_out), dtype, -bound, bound)
        b = jax.random.uniform(bk, (1, n_out), dtype, -bound, bound)
        return w, b

    k_cls, k1, k2, k3 = jax.random.split(key, 4)
    return {
        "class_embed": linear(k_cls, hidden_dim, num_class + 1),
        "bbox_embed": [
            linear(k1, hidden_dim, hidden_dim),
            linear(k2, hidden_dim, hidden_dim),
            linear(k3, hidden_dim, box_dim),
        ],
    }


def prepare_detr_head_params(params, scale, *, matmul_dtype=jnp.float32):
    """One-time weight prep: pad, place into output-slab columns, fuse
    class + bbox-layer-1 weights, and (optionally) cast matmul operands.

    Runs once at init time, not per forward call."""
    wc, bc = params["class_embed"]
    (w1, b1), (w2, b2), (w3, b3) = params["bbox_embed"]

    d, n_cls = wc.shape
    n_hid = w1.shape[1]
    n_box = w3.shape[1]

    d_pad = _round_up(d, _LANE)
    h_pad = _round_up(n_hid, _LANE)
    out_pad = _round_up(n_cls + n_box, _LANE)       # single combined output slab

    f32 = jnp.float32
    # Class head placed in columns [0, n_cls) of the out_pad-wide slab.
    wc_slab = _pad2d(jnp.asarray(wc, f32), d_pad, out_pad)
    bc_slab = _pad2d(jnp.asarray(bc, f32).reshape(1, -1), 1, out_pad)
    # bbox layer 1 padded to (d_pad, h_pad).
    w1_p = _pad2d(jnp.asarray(w1, f32), d_pad, h_pad)
    b1_p = _pad2d(jnp.asarray(b1, f32).reshape(1, -1), 1, h_pad)
    # Fused first matmul: X @ [Wc_slab | W1].
    wcat = jnp.concatenate([wc_slab, w1_p], axis=1).astype(matmul_dtype)
    bcat = jnp.concatenate([bc_slab, b1_p], axis=1)             # bias add stays f32
    # bbox layer 2.
    w2_p = _pad2d(jnp.asarray(w2, f32), h_pad, h_pad).astype(matmul_dtype)
    b2_p = _pad2d(jnp.asarray(b2, f32).reshape(1, -1), 1, h_pad)
    # bbox layer 3 / scale placed in columns [n_cls, n_cls + n_box).
    left, right = n_cls, out_pad - n_cls - n_box
    w3_slab = jnp.pad(jnp.asarray(w3, f32),
                      ((0, h_pad - w3.shape[0]), (left, right))).astype(matmul_dtype)
    b3_slab = jnp.pad(jnp.asarray(b3, f32).reshape(1, -1), ((0, 0), (left, right)))
    scale_slab = jnp.pad(jnp.asarray(scale, f32).reshape(1, -1), ((0, 0), (left, right)))

    return {
        "wcat": wcat, "bcat": bcat,
        "w2": w2_p, "b2": b2_p,
        "w3": w3_slab, "b3": b3_slab,
        "scale": scale_slab,
        "meta": dict(d=d, d_pad=d_pad, h_pad=h_pad, out_pad=out_pad,
                     n_cls=n_cls, n_box=n_box),
    }


def detr_prediction_head(hs, prepared, *, tile_m=1024):
    """Apply class_embed + bbox_embed(+tanh*scale) to decoder states `hs`.

    hs: (..., hidden_dim).  Returns (outputs_class, outputs_coord) with the
    same leading dims and last dims (num_class+1) and box_dim respectively.
    """
    meta = prepared["meta"]
    d, d_pad = meta["d"], meta["d_pad"]
    h_pad, out_pad = meta["h_pad"], meta["out_pad"]
    n_cls, n_box = meta["n_cls"], meta["n_box"]

    if hs.shape[-1] != d:
        raise ValueError(f"hs last dim {hs.shape[-1]} != prepared d {d}")

    lead = hs.shape[:-1]
    x = hs.reshape(-1, d)
    m = x.shape[0]

    # Only pad the contraction dim when it is not lane aligned (real DETR D=256
    # needs no pad -> no extra HBM round-trip of the activations).  Row padding
    # is never materialized: Pallas masks the ragged last row tile.
    if d_pad != d:
        x = jnp.pad(x, ((0, 0), (0, d_pad - d)))

    # Row tiling: <= 2048 (VMEM headroom on v7x), at least 2 grid steps when
    # there are enough rows (v7x megacore), multiple of 8 sublanes.
    tile_m = min(int(tile_m), 2048)
    tile_m = min(tile_m, max(_SUBLANE, _round_up(pl.cdiv(m, 2), 256)))
    tile_m = max(_SUBLANE, min(_round_up(tile_m, _SUBLANE), _round_up(m, _SUBLANE)))
    grid_m = pl.cdiv(m, tile_m)

    # VMEM budget: double-buffered x/out tiles + double-buffered resident weights.
    w_bytes = prepared["wcat"].dtype.itemsize
    x_bytes = x.dtype.itemsize
    vmem_bytes = (2 * tile_m * d_pad * x_bytes
                  + 2 * tile_m * out_pad * 4
                  + 2 * w_bytes * (d_pad * (out_pad + h_pad)
                                   + h_pad * h_pad + h_pad * out_pad)
                  + 2 * 4 * (3 * out_pad + 2 * h_pad))
    vmem_limit = int(min(48 << 20, max(32 << 20, 2 * vmem_bytes)))

    kernel = functools.partial(_detr_head_kernel, split=out_pad)

    row_spec = lambda shape: pl.BlockSpec(shape, lambda i: (i, 0))
    full_spec = lambda shape: pl.BlockSpec(shape, lambda i: (0, 0))

    out = pl.pallas_call(
        kernel,
        out_shape=jax.ShapeDtypeStruct((m, out_pad), jnp.float32),
        grid=(grid_m,),
        in_specs=[
            row_spec((tile_m, d_pad)),
            full_spec((d_pad, out_pad + h_pad)), full_spec((1, out_pad + h_pad)),
            full_spec((h_pad, h_pad)), full_spec((1, h_pad)),
            full_spec((h_pad, out_pad)), full_spec((1, out_pad)),
            full_spec((1, out_pad)),
        ],
        out_specs=row_spec((tile_m, out_pad)),
        compiler_params=pltpu.CompilerParams(
            dimension_semantics=("parallel",),
            vmem_limit_bytes=vmem_limit,
        ),
    )(x, prepared["wcat"], prepared["bcat"], prepared["w2"], prepared["b2"],
      prepared["w3"], prepared["b3"], prepared["scale"])

    outputs_class = out[:, :n_cls].reshape(*lead, n_cls)
    outputs_coord = out[:, n_cls:n_cls + n_box].reshape(*lead, n_box)
    return outputs_class, outputs_coord


def _reference_head(x, params, scale, matmul_dtype=jnp.float32):
    """Pure-JAX reference of the same head math (class Linear + MLP + tanh*scale)."""
    wc, bc = params["class_embed"]
    cls = jnp.dot(x.astype(matmul_dtype), wc.astype(matmul_dtype),
                  preferred_element_type=jnp.float32) + bc
    h = x
    for i, (w, b) in enumerate(params["bbox_embed"]):
        h = jnp.dot(h.astype(matmul_dtype), w.astype(matmul_dtype),
                    preferred_element_type=jnp.float32) + b
        if i < len(params["bbox_embed"]) - 1:
            h = jnp.maximum(h, 0.0)
    box = jnp.tanh(h) * scale.reshape(1, -1)
    return cls, box


if __name__ == "__main__":
    # Small shapes consistent with the DETR head usage:
    # hs = transformer output: (num_decoder_layers, batch, num_queries, d_model)
    num_decoder_layers, batch, num_queries, hidden_dim = 2, 2, 8, 32
    num_class, box_dim = 3, 7

    key = jax.random.PRNGKey(0)
    key, hk = jax.random.split(key)
    hs = jax.random.normal(
        hk, (num_decoder_layers, batch, num_queries, hidden_dim), jnp.float32)

    params = init_detr_head_params(key, hidden_dim, num_class, box_dim)
    scale = jnp.asarray([69.12, 39.68, 3.0, 5.0, 5.0, 2.0, 2.0], jnp.float32)

    # TODO(synk): transformer / input_proj conv / sine positional embedding /
    # query embedding / matcher+SetCriterion loss are out of scope for this kernel.

    x = hs.reshape(-1, hidden_dim)
    lead_shape = (num_decoder_layers, batch, num_queries)

    # --- f32 matmul path (matches the PyTorch module's f32 math) ---
    prepared_f32 = prepare_detr_head_params(params, scale, matmul_dtype=jnp.float32)
    outputs_class, outputs_coord = jax.block_until_ready(
        detr_prediction_head(hs, prepared_f32))

    ref_cls, ref_box = _reference_head(x, params, scale, jnp.float32)
    ref_cls = ref_cls.reshape(*lead_shape, num_class + 1)
    ref_box = ref_box.reshape(*lead_shape, box_dim)

    assert outputs_class.shape == (num_decoder_layers, batch, num_queries, num_class + 1)
    assert outputs_coord.shape == (num_decoder_layers, batch, num_queries, box_dim)
    assert jnp.allclose(outputs_class, ref_cls, atol=1e-3, rtol=1e-3)
    assert jnp.allclose(outputs_coord, ref_box, atol=1e-3, rtol=1e-3)

    # --- bf16-operand fast path (f32 accumulation + f32 epilogue) ---
    prepared_bf16 = prepare_detr_head_params(params, scale, matmul_dtype=jnp.bfloat16)
    cls_bf16, box_bf16 = jax.block_until_ready(
        detr_prediction_head(hs, prepared_bf16))
    ref_cls_bf16, ref_box_bf16 = _reference_head(x, params, scale, jnp.bfloat16)
    ref_cls_bf16 = ref_cls_bf16.reshape(*lead_shape, num_class + 1)
    ref_box_bf16 = ref_box_bf16.reshape(*lead_shape, box_dim)
    assert jnp.allclose(cls_bf16, ref_cls_bf16, atol=1e-2, rtol=1e-2)
    assert jnp.allclose(box_bf16, ref_box_bf16, atol=1e-2, rtol=1e-2)

    # Mirror DetrHead.forward bookkeeping (last decoder layer + aux outputs).
    forward_ret_dict = {
        "cls_preds": outputs_class[-1],
        "box_preds": outputs_coord[-1],
        "aux_outputs": [
            {"cls_preds": a, "box_preds": b}
            for a, b in zip(outputs_class[:-1], outputs_coord[:-1])
        ],
    }
    assert forward_ret_dict["cls_preds"].shape == (batch, num_queries, num_class + 1)

    print("KERNEL_OK")
</pallas_src>

<mosaic_0001>
module attributes {stable_mosaic.version = 11 : i64} {
  func.func @_detr_head_kernel(%arg0: i32, %arg1: memref<32x128xf32, #tpu.memory_space<vmem>>, %arg2: memref<128x256xf32, #tpu.memory_space<vmem>>, %arg3: memref<1x256xf32, #tpu.memory_space<vmem>>, %arg4: memref<128x128xf32, #tpu.memory_space<vmem>>, %arg5: memref<1x128xf32, #tpu.memory_space<vmem>>, %arg6: memref<128x128xf32, #tpu.memory_space<vmem>>, %arg7: memref<1x128xf32, #tpu.memory_space<vmem>>, %arg8: memref<1x128xf32, #tpu.memory_space<vmem>>, %arg9: memref<32x128xf32, #tpu.memory_space<vmem>>) attributes {dimension_semantics = [#tpu.dimension_semantics<parallel>], iteration_bounds = array<i64: 1>, scalar_prefetch = 0 : i64, scratch_operands = 0 : i64, tpu.core_type = #tpu.core_type<tc>, window_params = [{transform_indices = @transform_0, window_bounds = array<i64: 32, 128>}, {pipeline_mode = #tpu.pipeline_mode<synchronous>, transform_indices = @transform_1, window_bounds = array<i64: 128, 256>}, {pipeline_mode = #tpu.pipeline_mode<synchronous>, transform_indices = @transform_2, window_bounds = array<i64: 1, 256>}, {pipeline_mode = #tpu.pipeline_mode<synchronous>, transform_indices = @transform_3, window_bounds = array<i64: 128, 128>}, {pipeline_mode = #tpu.pipeline_mode<synchronous>, transform_indices = @transform_4, window_bounds = array<i64: 1, 128>}, {pipeline_mode = #tpu.pipeline_mode<synchronous>, transform_indices = @transform_5, window_bounds = array<i64: 128, 128>}, {pipeline_mode = #tpu.pipeline_mode<synchronous>, transform_indices = @transform_6, window_bounds = array<i64: 1, 128>}, {pipeline_mode = #tpu.pipeline_mode<synchronous>, transform_indices = @transform_7, window_bounds = array<i64: 1, 128>}, {transform_indices = @transform_8, window_bounds = array<i64: 32, 128>}]} {
    %c0 = arith.constant 0 : index
    %c0_0 = arith.constant 0 : index
    %0 = vector.load %arg1[%c0, %c0_0] : memref<32x128xf32, #tpu.memory_space<vmem>>, vector<32x128xf32>
    %c0_1 = arith.constant 0 : index
    %c0_2 = arith.constant 0 : index
    %1 = vector.load %arg2[%c0_1, %c0_2] : memref<128x256xf32, #tpu.memory_space<vmem>>, vector<128x256xf32>
    %cst = arith.constant dense<0.000000e+00> : vector<32x256xf32>
    %2 = tpu.matmul %0, %1, %cst {dimension_numbers = #tpu.dot_dimension_numbers<[1], [0], [0], [1], [0, 0, 1, 1], [], []>} : vector<32x128xf32>, vector<128x256xf32>, vector<32x256xf32> -> vector<32x256xf32>
    %c0_3 = arith.constant 0 : index
    %c0_4 = arith.constant 0 : index
    %3 = vector.load %arg3[%c0_3, %c0_4] : memref<1x256xf32, #tpu.memory_space<vmem>>, vector<1x256xf32>
    %4 = vector.broadcast %3 : vector<1x256xf32> to vector<32x256xf32>
    %5 = arith.addf %2, %4 : vector<32x256xf32>
    %6 = vector.extract_strided_slice %5 {offsets = [0, 0], sizes = [32, 128], strides = [1, 1]} : vector<32x256xf32> to vector<32x128xf32>
    %7 = vector.extract_strided_slice %5 {offsets = [0, 128], sizes = [32, 128], strides = [1, 1]} : vector<32x256xf32> to vector<32x128xf32>
    %cst_5 = arith.constant 0.000000e+00 : f32
    %8 = vector.broadcast %cst_5 : f32 to vector<32x128xf32>
    %9 = arith.maximumf %7, %8 : vector<32x128xf32>
    %c0_6 = arith.constant 0 : index
    %c0_7 = arith.constant 0 : index
    %10 = vector.load %arg4[%c0_6, %c0_7] : memref<128x128xf32, #tpu.memory_space<vmem>>, vector<128x128xf32>
    %cst_8 = arith.constant dense<0.000000e+00> : vector<32x128xf32>
    %11 = tpu.matmul %9, %10, %cst_8 {dimension_numbers = #tpu.dot_dimension_numbers<[1], [0], [0], [1], [0, 0, 1, 1], [], []>} : vector<32x128xf32>, vector<128x128xf32>, vector<32x128xf32> -> vector<32x128xf32>
    %c0_9 = arith.constant 0 : index
    %c0_10 = arith.constant 0 : index
    %12 = vector.load %arg5[%c0_9, %c0_10] : memref<1x128xf32, #tpu.memory_space<vmem>>, vector<1x128xf32>
    %13 = vector.broadcast %12 : vector<1x128xf32> to vector<32x128xf32>
    %14 = arith.addf %11, %13 : vector<32x128xf32>
    %cst_11 = arith.constant 0.000000e+00 : f32
    %15 = vector.broadcast %cst_11 : f32 to vector<32x128xf32>
    %16 = arith.maximumf %14, %15 : vector<32x128xf32>
    %c0_12 = arith.constant 0 : index
    %c0_13 = arith.constant 0 : index
    %17 = vector.load %arg6[%c0_12, %c0_13] : memref<128x128xf32, #tpu.memory_space<vmem>>, vector<128x128xf32>
    %cst_14 = arith.constant dense<0.000000e+00> : vector<32x128xf32>
    %18 = tpu.matmul %16, %17, %cst_14 {dimension_numbers = #tpu.dot_dimension_numbers<[1], [0], [0], [1], [0, 0, 1, 1], [], []>} : vector<32x128xf32>, vector<128x128xf32>, vector<32x128xf32> -> vector<32x128xf32>
    %c0_15 = arith.constant 0 : index
    %c0_16 = arith.constant 0 : index
    %19 = vector.load %arg7[%c0_15, %c0_16] : memref<1x128xf32, #tpu.memory_space<vmem>>, vector<1x128xf32>
    %20 = vector.broadcast %19 : vector<1x128xf32> to vector<32x128xf32>
    %21 = arith.addf %18, %20 : vector<32x128xf32>
    %22 = math.tanh %21 : vector<32x128xf32>
    %c0_17 = arith.constant 0 : index
    %c0_18 = arith.constant 0 : index
    %23 = vector.load %arg8[%c0_17, %c0_18] : memref<1x128xf32, #tpu.memory_space<vmem>>, vector<1x128xf32>
    %24 = vector.broadcast %23 : vector<1x128xf32> to vector<32x128xf32>
    %25 = arith.mulf %22, %24 : vector<32x128xf32>
    %26 = arith.addf %6, %25 : vector<32x128xf32>
    %c0_19 = arith.constant 0 : index
    %c0_20 = arith.constant 0 : index
    %27 = vector.load %arg9[%c0_19, %c0_20] : memref<32x128xf32, #tpu.memory_space<vmem>>, vector<32x128xf32>
    tpu.vector_store %arg9[%c0_19, %c0_20], %26 {strides = array<i32>} : memref<32x128xf32, #tpu.memory_space<vmem>>, vector<32x128xf32>,
    return
  }
  func.func @transform_0(%arg0: i32) -> (i32, i32) {
    %c0_i32 = arith.constant 0 : i32
    %c0_i32_0 = arith.constant 0 : i32
    return %arg0, %c0_i32 : i32, i32
  }
  func.func @transform_1(%arg0: i32) -> (i32, i32) {
    %c0_i32 = arith.constant 0 : i32
    %c0_i32_0 = arith.constant 0 : i32
    %c0_i32_1 = arith.constant 0 : i32
    return %c0_i32, %c0_i32_0 : i32, i32
  }
  func.func @transform_2(%arg0: i32) -> (i32, i32) {
    %c0_i32 = arith.constant 0 : i32
    %c0_i32_0 = arith.constant 0 : i32
    %c0_i32_1 = arith.constant 0 : i32
    return %c0_i32, %c0_i32_0 : i32, i32
  }
  func.func @transform_3(%arg0: i32) -> (i32, i32) {
    %c0_i32 = arith.constant 0 : i32
    %c0_i32_0 = arith.constant 0 : i32
    %c0_i32_1 = arith.constant 0 : i32
    return %c0_i32, %c0_i32_0 : i32, i32
  }
  func.func @transform_4(%arg0: i32) -> (i32, i32) {
    %c0_i32 = arith.constant 0 : i32
    %c0_i32_0 = arith.constant 0 : i32
    %c0_i32_1 = arith.constant 0 : i32
    return %c0_i32, %c0_i32_0 : i32, i32
  }
  func.func @transform_5(%arg0: i32) -> (i32, i32) {
    %c0_i32 = arith.constant 0 : i32
    %c0_i32_0 = arith.constant 0 : i32
    %c0_i32_1 = arith.constant 0 : i32
    return %c0_i32, %c0_i32_0 : i32, i32
  }
  func.func @transform_6(%arg0: i32) -> (i32, i32) {
    %c0_i32 = arith.constant 0 : i32
    %c0_i32_0 = arith.constant 0 : i32
    %c0_i32_1 = arith.constant 0 : i32
    return %c0_i32, %c0_i32_0 : i32, i32
  }
  func.func @transform_7(%arg0: i32) -> (i32, i32) {
    %c0_i32 = arith.constant 0 : i32
    %c0_i32_0 = arith.constant 0 : i32
    %c0_i32_1 = arith.constant 0 : i32
    return %c0_i32, %c0_i32_0 : i32, i32
  }
  func.func @transform_8(%arg0: i32) -> (i32, i32) {
    %c0_i32 = arith.constant 0 : i32
    %c0_i32_0 = arith.constant 0 : i32
    return %arg0, %c0_i32 : i32, i32
  }
}

</mosaic_0001>

<bundles_post_ra>
// kernel: tpu_custom_call.1
= control target key start
LH: loop header
LB: loop body
LE: loop exit
PB: predicated region body
PF: predicated region fallthrough
CT: control target
= control target key end

     0   :  { %13 = vsyncpa [#allocation3], 0  ;;  %s1025_s0 = inlined_call_operand.hbm [shape: f32[32,128], index: 0, kind: input, shape index: {}]   ;;  %s1026_s1 = inlined_call_operand.hbm [shape: f32[128,256], index: 1, kind: input, shape index: {}]   ;;  %s1027_s2 = inlined_call_operand.vmem [shape: f32[1,256], index: 2, kind: input, shape index: {}]   ;;  %s1028_s3 = inlined_call_operand.hbm [shape: f32[128,128], index: 3, kind: input, shape index: {}]   ;;  %s1029_s4 = inlined_call_operand.vmem [shape: f32[1,128], index: 4, kind: input, shape index: {}]   ;;  %s1030_s5 = inlined_call_operand.hbm [shape: f32[128,128], index: 5, kind: input, shape index: {}]   ;;  %s1031_s6 = inlined_call_operand.vmem [shape: f32[1,128], index: 6, kind: input, shape index: {}]   ;;  %s1032_s7 = inlined_call_operand.vmem [shape: f32[1,128], index: 7, kind: input, shape index: {}]   ;;  %s1033_s8 = inlined_call_operand.hbm [shape: f32[32,128], index: 8, kind: output, shape index: {}]  }
   0x1   :  { %14 = vsyncpa [#allocation6], 0 }
   0x2   :  { %15 = vsyncpa [#allocation9], 0 }
   0x3   :  { %16 = vsyncpa [#allocation4], 0  ;;  %s855_s27 = smov [#allocation5]   ;;  %s737_s9 = scalar_lea.hbm %s1026_s1, 4096 }
   0x4   :  { %s34_s28 = sshll.u32 %s855_s27, 4  ;;  %p738_p0 = scmp.ne.s32.totalorder %s1026_s1, %s737_s9  ;;  %s35_s28 = int_to_ptr.vmem [resolvable:$true] %s34_s28 }
   0x5   :  { %p741_p1 = scmp.lt.u32.totalorder %s737_s9, %s1026_s1 }
   0x7   :  { %p743_p2 = pnand %p741_p1, %p738_p0 }
   0x9   :  { %746 = shalt.err (!%p743_p2)
}
   0xa   :  { %s747_s14 = scalar_lea.vmem %s35_s28, 4096  ;;  %p752_p4 = scmp.lt.s32.totalorder %s35_s28, %s35_s28 }
   0xb   :  { %p748_p3 = scmp.ne.s32.totalorder %s35_s28, %s747_s14  ;;  %p753_p5 = scmp.lt.s32.totalorder %s747_s14, %s747_s14 }
   0xd   :  { %p754_p6 = por %p753_p5, %p752_p4 }
   0xf   :  { %p755_p7 = pnand %p754_p6, %p748_p3 }
  0x11   :  { %758 = shalt.err (!%p755_p7)
}
  0x12   :  { %s856_s15 = smov 256   ;;  %s857_s16 = smov 16  }
  0x13   :  { %40 = dma.hbm_to_vmem [thread:$0]  %s1026_s1, 4096, %s35_s28, [#allocation6], %s856_s15, %s856_s15, %s857_s16  }
  0x14   :  { %s858_s19 = smov [#allocation2]   ;;  %s759_s23 = scalar_lea.hbm %s1025_s0, 512 }
  0x15   :  { %s22_s20 = sshll.u32 %s858_s19, 4  ;;  %p760_p8 = scmp.ne.s32.totalorder %s1025_s0, %s759_s23  ;;  %s23_s20 = int_to_ptr.vmem [resolvable:$true] %s22_s20 }
  0x16   :  { %p763_p9 = scmp.lt.u32.totalorder %s759_s23, %s1025_s0 }
  0x18   :  { %p765_p10 = pnand %p763_p9, %p760_p8 }
  0x1a   :  { %768 = shalt.err (!%p765_p10)
}
  0x1b   :  { %s769_s29 = scalar_lea.vmem %s23_s20, 512  ;;  %p774_p12 = scmp.lt.s32.totalorder %s23_s20, %s23_s20 }
  0x1c   :  { %p770_p11 = scmp.ne.s32.totalorder %s23_s20, %s769_s29  ;;  %p775_p13 = scmp.lt.s32.totalorder %s769_s29, %s769_s29 }
  0x1e   :  { %p776_p0 = por %p775_p13, %p774_p12 }
  0x20   :  { %p777_p1 = pnand %p776_p0, %p770_p11 }
  0x22   :  { %780 = shalt.err (!%p777_p1)
}
  0x23   :  { %s859_s1 = smov 128   ;;  %s860_s28 = smov 8  }
  0x24   :  { %28 = dma.hbm_to_vmem [thread:$0]  %s1025_s0, 512, %s23_s20, [#allocation3], %s859_s1, %s859_s1, %s860_s28  }
  0x25   :  { %s861_s10 = smov [#allocation7]   ;;  %s862_s12 = smov [#allocation8]  }
  0x26   :  { %s48_s11 = sshll.u32 %s861_s10, 4  ;;  %s62_s13 = sshll.u32 %s862_s12, 4  ;;  %s49_s11 = int_to_ptr.vmem [resolvable:$true] %s48_s11  ;;  %s937_s13 = int_to_ptr.vmem [resolvable:$true] %s62_s13 }
  0x27   :  { %s781_s16 = scalar_lea.hbm %s1028_s3, 2048 }
  0x28   :  { %p782_p2 = scmp.ne.s32.totalorder %s1028_s3, %s781_s16  ;;  %p785_p3 = scmp.lt.u32.totalorder %s781_s16, %s1028_s3 }
  0x2a   :  { %p787_p4 = pnand %p785_p3, %p782_p2 }
  0x2c   :  { %790 = shalt.err (!%p787_p4)
}
  0x2d   :  { %s791_s0 = scalar_lea.vmem %s49_s11, 2048  ;;  %p796_p6 = scmp.lt.s32.totalorder %s49_s11, %s49_s11 }
  0x2e   :  { %p792_p5 = scmp.ne.s32.totalorder %s49_s11, %s791_s0  ;;  %p797_p7 = scmp.lt.s32.totalorder %s791_s0, %s791_s0 }
  0x30   :  { %p798_p8 = por %p797_p7, %p796_p6 }
  0x32   :  { %p799_p9 = pnand %p798_p8, %p792_p5 }
  0x34   :  { %802 = shalt.err (!%p799_p9)
}
  0x35   :  { %54 = dma.hbm_to_vmem [thread:$0]  %s1028_s3, 2048, %s49_s11, [#allocation6], %s859_s1, %s859_s1, %s860_s28  }
  0x36   :  { %s803_s25 = scalar_lea.hbm %s1030_s5, 2048 }
  0x37   :  { %p804_p10 = scmp.ne.s32.totalorder %s1030_s5, %s803_s25  ;;  %p807_p11 = scmp.lt.u32.totalorder %s803_s25, %s1030_s5 }
  0x39   :  { %p809_p12 = pnand %p807_p11, %p804_p10 }
  0x3b   :  { %812 = shalt.err (!%p809_p12)
}
  0x3c   :  { %s813_s9 = scalar_lea.vmem %s937_s13, 2048  ;;  %p818_p0 = scmp.lt.s32.totalorder %s937_s13, %s937_s13 }
  0x3d   :  { %p814_p13 = scmp.ne.s32.totalorder %s937_s13, %s813_s9  ;;  %p819_p1 = scmp.lt.s32.totalorder %s813_s9, %s813_s9 }
  0x3f   :  { %p820_p2 = por %p819_p1, %p818_p0 }
  0x41   :  { %p821_p3 = pnand %p820_p2, %p814_p13 }
  0x43   :  { %824 = shalt.err (!%p821_p3)
}
  0x44   :  { %68 = dma.hbm_to_vmem [thread:$0]  %s1030_s5, 2048, %s937_s13, [#allocation9], %s859_s1, %s859_s1, %s860_s28  }
  0x45   :  { %847 = dma.done.wait [#allocation3], 512  }
  0x46   :  { %848 = vsyncadd [#allocation3], 4294966784 }
  0x47   :  { %849 = dma.done.wait [#allocation6], 6144  }
  0x48   :  { %850 = vsyncadd [#allocation6], 4294961152 }
  0x49   :  { %851 = dma.done.wait [#allocation9], 2048  }
  0x4a   :  { %852 = vsyncadd [#allocation9], 4294965248  ;;  %v863_v0 = vmov 0.0   ;;  %v90_v1 = vld [vmem:[#allocation5 + $0x8] sm:$0xff]  ;;  %v92_v2 = vld [vmem:[#allocation5 + $0x18] sm:$0xff] }
  0x4b   :  { %197 = vmatprep.mubr.f32.mxu0 %v863_v0  ;;  %v89_v3 = vld [vmem:[#allocation5] sm:$0xff]  ;;  %v607_v4 = vpack.c.bf16 %v92_v2, %v90_v1  ;;  %v91_v5 = vld [vmem:[#allocation5 + $0x10] sm:$0xff]  ;;  %v94_v6 = vld [vmem:[#allocation5 + $0x28] sm:$0xff] }
  0x4c   :  { %v96_v7 = vld [vmem:[#allocation5 + $0x38] sm:$0xff]  ;;  %v609_v8 = vpack.c.bf16 %v91_v5, %v89_v3  ;;  %v93_v10 = vld [vmem:[#allocation5 + $0x20] sm:$0xff]  ;;  %v95_v11 = vld [vmem:[#allocation5 + $0x30] sm:$0xff] }
  0x4d   :  { %v611_v9 = vpack.c.bf16 %v96_v7, %v94_v6  ;;  %v98_v12 = vld [vmem:[#allocation5 + $0x48] sm:$0xff]  ;;  %608 = vmatprep.subr.bf16.mxu0 %v607_v4  ;;  %v100_v13 = vld [vmem:[#allocation5 + $0x58] sm:$0xff]  ;;  %v613_v14 = vpack.c.bf16 %v95_v11, %v93_v10  ;;  %v97_v16 = vld [vmem:[#allocation5 + $0x40] sm:$0xff] }
  0x4e   :  { %610 = vmatpush1.bf16.msra.mxu0 %v609_v8  ;;  %v615_v15 = vpack.c.bf16 %v100_v13, %v98_v12  ;;  %v99_v17 = vld [vmem:[#allocation5 + $0x50] sm:$0xff]  ;;  %v102_v18 = vld [vmem:[#allocation5 + $0x68] sm:$0xff]  ;;  %v104_v19 = vld [vmem:[#allocation5 + $0x78] sm:$0xff] }
  0x4f   :  { %612 = vmatprep.subr.bf16.mxu0 %v611_v9  ;;  %v617_v20 = vpack.c.bf16 %v99_v17, %v97_v16  ;;  %v619_v21 = vpack.c.bf16 %v104_v19, %v102_v18  ;;  %v101_v22 = vld [vmem:[#allocation5 + $0x60] sm:$0xff]  ;;  %v103_v23 = vld [vmem:[#allocation5 + $0x70] sm:$0xff]  ;;  %v106_v24 = vld [vmem:[#allocation5 + $0x88] sm:$0xff] }
  0x50   :  { %v108_v25 = vld [vmem:[#allocation5 + $0x98] sm:$0xff]  ;;  %v105_v26 = vld [vmem:[#allocation5 + $0x80] sm:$0xff]  ;;  %v621_v27 = vpack.c.bf16 %v103_v23, %v101_v22  ;;  %v227_v29 = vld [vmem:[#allocation7 + $0x8] sm:$0xff] }
  0x51   :  { %v226_v28 = vld [vmem:[#allocation7] sm:$0xff]  ;;  %v228_v30 = vld [vmem:[#allocation7 + $0x10] sm:$0xff]  ;;  %v623_v31 = vpack.c.bf16 %v108_v25, %v106_v24  ;;  %v110_v33 = vld [vmem:[#allocation5 + $0xa8] sm:$0xff] }
  0x52   :  { %614 = vmatpush1.bf16.msra.mxu0 %v613_v14  ;;  %v107_v32 = vld [vmem:[#allocation5 + $0x90] sm:$0xff]  ;;  %v639_v34 = vpack.c.bf16 %v227_v29, %v226_v28  ;;  %v229_v35 = vld [vmem:[#allocation7 + $0x18] sm:$0xff]  ;;  %v230_v38 = vld [vmem:[#allocation7 + $0x20] sm:$0xff] }
  0x53   :  { %616 = vmatprep.subr.bf16.mxu0 %v615_v15  ;;  %v112_v36 = vld [vmem:[#allocation5 + $0xb8] sm:$0xff]  ;;  %v643_v37 = vpack.c.bf16 %v229_v35, %v228_v30  ;;  %v231_v39 = vld [vmem:[#allocation7 + $0x28] sm:$0xff]  ;;  %v625_v40 = vpack.c.bf16 %v107_v32, %v105_v26  ;;  %v109_v42 = vld [vmem:[#allocation5 + $0xa0] sm:$0xff] }
  0x54   :  { %640 = vmatprep.subr.bf16.mxu1 %v639_v34  ;;  %v627_v41 = vpack.c.bf16 %v112_v36, %v110_v33  ;;  %v111_v43 = vld [vmem:[#allocation5 + $0xb0] sm:$0xff]  ;;  %v114_v44 = vld [vmem:[#allocation5 + $0xc8] sm:$0xff]  ;;  %v647_v45 = vpack.c.bf16 %v231_v39, %v230_v38  ;;  %v116_v46 = vld [vmem:[#allocation5 + $0xd8] sm:$0xff] }
  0x55   :  { %642 = vmatpush3.bf16.msra.mxu1 %v639_v34  ;;  %v232_v47 = vld [vmem:[#allocation7 + $0x30] sm:$0xff]  ;;  %v233_v48 = vld [vmem:[#allocation7 + $0x38] sm:$0xff]  ;;  %v629_v49 = vpack.c.bf16 %v111_v43, %v109_v42  ;;  %v631_v50 = vpack.c.bf16 %v116_v46, %v114_v44  ;;  %v113_v51 = vld [vmem:[#allocation5 + $0xc0] sm:$0xff]  ;;  %v123_v34 = vlaneseq }
  0x56   :  { %618 = vmatpush1.bf16.msra.mxu0 %v617_v20  ;;  %644 = vmatprep.subr.bf16.mxu1 %v643_v37  ;;  %v115_v52 = vld [vmem:[#allocation5 + $0xd0] sm:$0xff]  ;;  %v118_v53 = vld [vmem:[#allocation5 + $0xe8] sm:$0xff]  ;;  %v651_v54 = vpack.c.bf16 %v233_v48, %v232_v47  ;;  %v120_v55 = vld [vmem:[#allocation5 + $0xf8] sm:$0xff] }
  0x57   :  { %620 = vmatprep.subr.bf16.mxu0 %v619_v21  ;;  %v234_v56 = vld [vmem:[#allocation7 + $0x40] sm:$0xff]  ;;  %v235_v57 = vld [vmem:[#allocation7 + $0x48] sm:$0xff]  ;;  %v633_v58 = vpack.c.bf16 %v115_v52, %v113_v51  ;;  %v635_v59 = vpack.c.bf16 %v120_v55, %v118_v53  ;;  %v119_v61 = vld [vmem:[#allocation5 + $0xf0] sm:$0xff]  ;;  %v978_v35 = vshrl.u32 %v123_v34, 7 }
  0x58   :  { %v117_v60 = vld [vmem:[#allocation5 + $0xe0] sm:$0xff]  ;;  %v655_v62 = vpack.c.bf16 %v235_v57, %v234_v56  ;;  %v236_v63 = vld [vmem:[#allocation7 + $0x50] sm:$0xff]  ;;  %v237_v1 = vld [vmem:[#allocation7 + $0x58] sm:$0xff] }
  0x59   :  { %646 = vmatpush3.bf16.msra.mxu1 %v643_v37  ;;  %v637_v2 = vpack.c.bf16 %v119_v61, %v117_v60  ;;  %v659_v3 = vpack.c.bf16 %v237_v1, %v236_v63  ;;  %v85_v4 = vld [vmem:[#allocation2] sm:$0xff]  ;;  %v86_v5 = vld [vmem:[#allocation2 + $0x8] sm:$0xff]  ;;  %v87_v6 = vld [vmem:[#allocation2 + $0x10] sm:$0xff]  ;;  %v129_v36 = vsub.s32 1, %v978_v35 }
  0x5a   :  { %622 = vmatpush1.bf16.msra.mxu0 %v621_v27  ;;  %648 = vmatprep.subr.bf16.mxu1 %v647_v45  ;;  %v88_v7 = vld [vmem:[#allocation2 + $0x18] sm:$0xff]  ;;  %v238_v8 = vld [vmem:[#allocation7 + $0x60] sm:$0xff]  ;;  %v239_v9 = vld [vmem:[#allocation7 + $0x68] sm:$0xff] }
  0x5b   :  { %624 = vmatprep.subr.bf16.mxu0 %v623_v31  ;;  %v663_v10 = vpack.c.bf16 %v239_v9, %v238_v8  ;;  %v240_v11 = vld [vmem:[#allocation7 + $0x70] sm:$0xff]  ;;  %v241_v12 = vld [vmem:[#allocation7 + $0x78] sm:$0xff]  ;;  %v338_v14 = vld [vmem:[#allocation8] sm:$0xff] }
  0x5c   :  { %v667_v13 = vpack.c.bf16 %v241_v12, %v240_v11  ;;  %v339_v15 = vld [vmem:[#allocation8 + $0x8] sm:$0xff]  ;;  %v340_v16 = vld [vmem:[#allocation8 + $0x10] sm:$0xff]  ;;  %v341_v18 = vld [vmem:[#allocation8 + $0x18] sm:$0xff] }
  0x5d   :  { %650 = vmatpush3.bf16.msra.mxu1 %v647_v45  ;;  %v671_v17 = vpack.c.bf16 %v339_v15, %v338_v14  ;;  %v675_v19 = vpack.c.bf16 %v341_v18, %v340_v16  ;;  %v342_v20 = vld [vmem:[#allocation8 + $0x20] sm:$0xff]  ;;  %v344_v22 = vld [vmem:[#allocation8 + $0x30] sm:$0xff]  ;;  %v345_v23 = vld [vmem:[#allocation8 + $0x38] sm:$0xff] }
  0x5e   :  { %626 = vmatpush1.bf16.msra.mxu0 %v625_v40  ;;  %652 = vmatprep.subr.bf16.mxu1 %v651_v54  ;;  %v683_v24 = vpack.c.bf16 %v345_v23, %v344_v22  ;;  %v346_v25 = vld [vmem:[#allocation8 + $0x40] sm:$0xff]  ;;  %v347_v26 = vld [vmem:[#allocation8 + $0x48] sm:$0xff]  ;;  %v348_v28 = vld [vmem:[#allocation8 + $0x50] sm:$0xff] }
  0x5f   :  { %628 = vmatprep.subr.bf16.mxu0 %v627_v41  ;;  %v687_v27 = vpack.c.bf16 %v347_v26, %v346_v25  ;;  %v349_v29 = vld [vmem:[#allocation8 + $0x58] sm:$0xff]  ;;  %v350_v31 = vld [vmem:[#allocation8 + $0x60] sm:$0xff]  ;;  %v351_v32 = vld [vmem:[#allocation8 + $0x68] sm:$0xff] }
  0x60   :  { %v691_v30 = vpack.c.bf16 %v349_v29, %v348_v28  ;;  %v695_v33 = vpack.c.bf16 %v351_v32, %v350_v31  ;;  %v984_v37 = vld [vmem:[%s1027_s2] sm:$0x3]  ;;  %v352_v55 = vld [vmem:[#allocation8 + $0x70] sm:$0xff]  ;;  %v353_v56 = vld [vmem:[#allocation8 + $0x78] sm:$0xff] }
  0x61   :  { %654 = vmatpush3.bf16.msra.mxu1 %v651_v54  ;;  %v130_v38 = vrot.slane %v984_v37, %v129_v36  ;;  %v699_v57 = vpack.c.bf16 %v353_v56, %v352_v55  ;;  %v489_v8 = vld [vmem:[%s1031_s6] ss:$0 sm:$0xff]  ;;  %s864_s6 = smov [#allocation10]  }
  0x62   :  { %630 = vmatpush1.bf16.msra.mxu0 %v629_v49  ;;  %656 = vmatprep.subr.bf16.mxu1 %v655_v62 }
  0x63   :  { %632 = vmatprep.subr.bf16.mxu0 %v631_v50 }
  0x65   :  { %658 = vmatpush3.bf16.msra.mxu1 %v655_v62 }
  0x66   :  { %634 = vmatpush1.bf16.msra.mxu0 %v633_v58  ;;  %660 = vmatprep.subr.bf16.mxu1 %v659_v3  ;;  %v488_v58 = vld [vmem:[%s1029_s4] ss:$0 sm:$0xff] }
  0x67   :  { %636 = vmatprep.subr.bf16.mxu0 %v635_v59 }
  0x69   :  { %662 = vmatpush3.bf16.msra.mxu1 %v659_v3 }
  0x6a   :  { %638 = vmatpush1.bf16.msra.mxu0 %v637_v2  ;;  %664 = vmatprep.subr.bf16.mxu1 %v663_v10 }
  0x6b   :  { %672 = vmatprep.subr.bf16.mxu0 %v671_v17 }
  0x6d   :  { %198 = vmatmul.mubr.f32.vlgmr.msra.gmra.mrb[0].mxu0 %v85_v4  ;;  %666 = vmatpush3.bf16.msra.mxu1 %v663_v10 }
  0x6e   :  { %203 = vmatprep.mubr.f32.mxu0 %v863_v0  ;;  %668 = vmatprep.subr.bf16.mxu1 %v667_v13 }
  0x6f   :  { %674 = vmatpush3.bf16.msra.mxu0 %v671_v17 }
  0x70   :  { %676 = vmatprep.subr.bf16.mxu0 %v675_v19 }
  0x71   :  { %204 = vmatmul.mubr.f32.gmra.mrb[2].mxu0 %v86_v5  ;;  %670 = vmatpush3.bf16.msra.mxu1 %v667_v13  ;;  %v125_v13 = vsub.s32 0, %v978_v35 }
  0x72   :  { %209 = vmatprep.mubr.f32.mxu0 %v863_v0  ;;  %703 = vmatprep.subr.bf16.mxu1 %v671_v17 }
  0x73   :  { %678 = vmatpush3.bf16.msra.mxu0 %v675_v19  ;;  %v126_v18 = vrot.slane %v984_v37, %v125_v13 }
  0x75   :  { %210 = vmatmul.mubr.f32.gmra.mrb[4].mxu0 %v87_v6 }
  0x76   :  { %215 = vmatprep.mubr.f32.mxu0 %v863_v0  ;;  %v343_v0 = vld [vmem:[#allocation8 + $0x28] sm:$0xff] }
  0x77   :  { %v679_v21 = vpack.c.bf16 %v343_v0, %v342_v20 }
  0x79   :  { %216 = vmatmul.mubr.f32.gmra.mrb[6].mxu0 %v88_v7  ;;  %680 = vmatprep.subr.bf16.mxu0 %v679_v21 }
  0x7a   :  { %682 = vmatpush3.bf16.msra.mxu0 %v679_v21 }
  0x7b   :  { %684 = vmatprep.subr.bf16.mxu0 %v683_v24 }
  0x7e   :  { %686 = vmatpush3.bf16.msra.mxu0 %v683_v24 }
  0x7f   :  { %688 = vmatprep.subr.bf16.mxu0 %v687_v27 }
  0x82   :  { %690 = vmatpush3.bf16.msra.mxu0 %v687_v27 }
  0x83   :  { %692 = vmatprep.subr.bf16.mxu0 %v691_v30 }
  0x86   :  { %694 = vmatpush3.bf16.msra.mxu0 %v691_v30 }
  0x87   :  { %696 = vmatprep.subr.bf16.mxu0 %v695_v33 }
  0x8a   :  { %698 = vmatpush3.bf16.msra.mxu0 %v695_v33 }
  0x8b   :  { %700 = vmatprep.subr.bf16.mxu0 %v699_v57 }
  0x8e   :  { %702 = vmatpush3.bf16.msra.mxu0 %v699_v57 }
 0x140   :  { %v987_v39 = vpop.f32.mrb[0].mxu0 }
 0x141   :  { %v201_v40 = vpop.f32.mrb[1].mxu0  ;;  %v200_v23 = vadd.f32 %v987_v39, %v126_v18 }
 0x142   :  { %v202_v41 = vadd.f32 %v201_v40, %v130_v38 }
 0x144   :  { %v989_v42 = vpop.f32.mrb[2].mxu0  ;;  %v222_v43 = vmax.f32 %v202_v41, 0.0 }
 0x145   :  { %v207_v44 = vpop.f32.mrb[3].mxu0 }
 0x146   :  { %v208_v45 = vadd.f32 %v207_v44, %v130_v38  ;;  %563 = vmatprep.mubr.f32.mxu1 %v222_v43 }
 0x148   :  { %v223_v46 = vmax.f32 %v208_v45, 0.0  ;;  %v991_v47 = vpop.f32.mrb[4].mxu0 }
 0x149   :  { %v213_v48 = vpop.f32.mrb[5].mxu0  ;;  %v212_v31 = vadd.f32 %v991_v47, %v126_v18 }
 0x14a   :  { %v214_v49 = vadd.f32 %v213_v48, %v130_v38  ;;  %564 = vmatmul.mubr.f32.vlgmr.msra.gmra.mrb[0].mxu1 %v223_v46 }
 0x14b   :  { %711 = vmatpush3.bf16.msra.mxu1 %v671_v17 }
 0x14c   :  { %v224_v50 = vmax.f32 %v214_v49, 0.0  ;;  %v993_v51 = vpop.f32.mrb[6].mxu0  ;;  %704 = vmatprep.subr.bf16.mxu1 %v675_v19 }
 0x14d   :  { %v219_v52 = vpop.f32.mrb[7].mxu0  ;;  %v218_v29 = vadd.f32 %v993_v51, %v126_v18 }
 0x14e   :  { %v220_v53 = vadd.f32 %v219_v52, %v130_v38  ;;  %566 = vmatprep.mubr.f32.mxu1 %v224_v50 }
 0x14f   :  { %712 = vmatpush3.bf16.msra.mxu1 %v675_v19  ;;  %v490_v19 = vld [vmem:[%s1032_s7] ss:$0 sm:$0xff]  ;;  %s474_s7 = sshll.u32 %s864_s6, 4  ;;  %s475_s7 = int_to_ptr.vmem [resolvable:$true] %s474_s7 }
 0x150   :  { %v225_v54 = vmax.f32 %v220_v53, 0.0  ;;  %705 = vmatprep.subr.bf16.mxu1 %v679_v21  ;;  %s825_s16 = scalar_lea.vmem %s475_s7, 512  ;;  %p830_p5 = scmp.lt.s32.totalorder %s475_s7, %s475_s7 }
 0x151   :  { %p826_p4 = scmp.ne.s32.totalorder %s475_s7, %s825_s16  ;;  %p831_p6 = scmp.lt.s32.totalorder %s825_s16, %s825_s16 }
 0x152   :  { %567 = vmatmul.mubr.f32.gmra.mrb[2].mxu1 %v225_v54 }
 0x153   :  { %713 = vmatpush3.bf16.msra.mxu1 %v679_v21  ;;  %v206_v21 = vadd.f32 %v989_v42, %v126_v18  ;;  %p832_p7 = por %p831_p6, %p830_p5 }
 0x154   :  { %706 = vmatprep.subr.bf16.mxu1 %v683_v24 }
 0x155   :  { %p833_p8 = pnand %p832_p7, %p826_p4 }
 0x157   :  { %714 = vmatpush3.bf16.msra.mxu1 %v683_v24 }
 0x158   :  { %707 = vmatprep.subr.bf16.mxu1 %v687_v27 }
 0x15b   :  { %715 = vmatpush3.bf16.msra.mxu1 %v687_v27 }
 0x15c   :  { %708 = vmatprep.subr.bf16.mxu1 %v691_v30 }
 0x15f   :  { %716 = vmatpush3.bf16.msra.mxu1 %v691_v30 }
 0x160   :  { %709 = vmatprep.subr.bf16.mxu1 %v695_v33 }
 0x163   :  { %717 = vmatpush3.bf16.msra.mxu1 %v695_v33 }
 0x164   :  { %710 = vmatprep.subr.bf16.mxu1 %v699_v57 }
 0x167   :  { %718 = vmatpush3.bf16.msra.mxu1 %v699_v57 }
 0x21d   :  { %v565_v59 = vpop.f32.mrb[0].mxu1 }
 0x21e   :  { %v321_v60 = vadd.f32 %v565_v59, %v488_v58  ;;  %v315_v61 = vpop.f32.mrb[1].mxu1 }
 0x21f   :  { %v316_v62 = vadd.f32 %v488_v58, %v315_v61 }
 0x220   :  { %v335_v1 = vmax.f32 %v321_v60, 0.0 }
 0x221   :  { %v334_v63 = vmax.f32 %v316_v62, 0.0 }
 0x223   :  { %601 = vmatprep.mubr.f32.mxu0 %v334_v63 }
 0x224   :  { %602 = vmatmul.mubr.f32.vlgmr.msra.gmra.mrb[8].mxu0 %v335_v1 }
 0x225   :  { %v568_v2 = vpop.f32.mrb[2].mxu1 }
 0x226   :  { %v331_v3 = vadd.f32 %v568_v2, %v488_v58  ;;  %v325_v4 = vpop.f32.mrb[3].mxu1 }
 0x227   :  { %v326_v5 = vadd.f32 %v488_v58, %v325_v4 }
 0x228   :  { %v337_v7 = vmax.f32 %v331_v3, 0.0 }
 0x229   :  { %v336_v6 = vmax.f32 %v326_v5, 0.0 }
 0x22b   :  { %604 = vmatprep.mubr.f32.mxu1 %v336_v6 }
 0x22c   :  { %605 = vmatmul.mubr.f32.vlgmr.msra.gmra.mrb[4].mxu1 %v337_v7 }
 0x2f7   :  { %v603_v9 = vpop.f32.mrb[8].mxu0 }
 0x2f8   :  { %v433_v10 = vadd.f32 %v603_v9, %v489_v8  ;;  %v427_v11 = vpop.f32.mrb[9].mxu0 }
 0x2f9   :  { %v428_v12 = vadd.f32 %v489_v8, %v427_v11 }
 0x2fa   :  { %729 = vtanh.f32 %v433_v10 }
 0x2fb   :  { %731 = vtanh.f32 %v428_v12 }
 0x2ff   :  { %v606_v14 = vpop.f32.mrb[4].mxu1 }
 0x300   :  { %v443_v15 = vadd.f32 %v606_v14, %v489_v8  ;;  %v437_v16 = vpop.f32.mrb[5].mxu1 }
 0x301   :  { %v438_v17 = vadd.f32 %v489_v8, %v437_v16 }
 0x302   :  { %733 = vtanh.f32 %v443_v15 }
 0x303   :  { %735 = vtanh.f32 %v438_v17 }
 0x304   :  { %v730_v20 = vpop.eup %729 }
 0x305   :  { %v732_v0 = vpop.eup %731  ;;  %v458_v22 = vmul.f32 %v730_v20, %v490_v19 }
 0x306   :  { %v457_v24 = vmul.f32 %v732_v0, %v490_v19 }
 0x307   :  { %v462_v25 = vadd.f32 %v458_v22, %v206_v21 }
 0x308   :  { %v461_v26 = vadd.f32 %v457_v24, %v200_v23 }
 0x309   :  { %466 = vst [vmem:[#allocation10 + $0x8] sm:$0xff] %v462_v25 }
 0x30a   :  { %465 = vst [vmem:[#allocation10] sm:$0xff] %v461_v26 }
 0x30c   :  { %v734_v27 = vpop.eup %733 }
 0x30d   :  { %v736_v28 = vpop.eup %735  ;;  %v460_v30 = vmul.f32 %v734_v27, %v490_v19 }
 0x30e   :  { %v459_v32 = vmul.f32 %v736_v28, %v490_v19 }
 0x30f   :  { %v464_v33 = vadd.f32 %v460_v30, %v218_v29 }
 0x310   :  { %v463_v34 = vadd.f32 %v459_v32, %v212_v31 }
 0x311   :  { %468 = vst [vmem:[#allocation10 + $0x18] sm:$0xff] %v464_v33 }
 0x312   :  { %467 = vst [vmem:[#allocation10 + $0x10] sm:$0xff] %v463_v34 }
 0x313   :  { %836 = shalt.err (!%p833_p8)
}
 0x314   :  { %s837_s19 = scalar_lea.hbm %s1033_s8, 512 }
 0x315   :  { %p838_p9 = scmp.ne.s32.totalorder %s1033_s8, %s837_s19  ;;  %p841_p10 = scmp.lt.u32.totalorder %s837_s19, %s1033_s8 }
 0x317   :  { %p843_p11 = pnand %p841_p10, %p838_p9 }
 0x319   :  { %846 = shalt.err (!%p843_p11)
}
 0x31a   :  { %480 = dma.vmem_to_hbm [thread:$0]  %s475_s7, 512, %s1033_s8, [#allocation4], %s859_s1, %s859_s1, %s860_s28  }
 0x31b   :  { %853 = dma.done.wait [#allocation4], 512  }
 0x31c   :  { %854 = vsyncadd [#allocation4], 4294966784 }
 0x31d   :  { %484 = vsyncpa [#allocation3], 1 }
 0x31e   :  { %485 = vsyncpa [#allocation6], 1 }
 0x31f   :  { %486 = vsyncpa [#allocation9], 1 }
 0x320   :  { %487 = vsyncpa [#allocation4], 1 }

</bundles_post_ra>
